<compile_context>
chip_gen: v7x
topology: tpu7x:2x2x1
jax: 0.10.0
libtpu: 0.0.40
codegen_flags: <defaults>
</compile_context>

<pallas_src>
import functools

import jax
import jax.numpy as jnp
from jax import lax
from jax.experimental import pallas as pl
from jax.experimental.pallas import tpu as pltpu


def mean_pool_kernel(x_ref, mask_ref, out_ref, acc_ref, msum_ref, *, seq_rem, batch_rem):
    # x_ref:    (TB, tS, tH) tile of hidden states (native dtype)
    # mask_ref: (TB, tS)     tile of the attention mask (lane-dense along S)
    # out_ref:  (TB, tH)     output block (written only on the last seq step)
    # acc_ref:  (TB, tH)     f32 masked-sum accumulator (VMEM scratch)
    # msum_ref: (TB, 1)      f32 token-count accumulator (VMEM scratch)
    TB, tS, tH = x_ref.shape
    b = pl.program_id(0)
    k = pl.program_id(2)
    nb = pl.num_programs(0)
    nk = pl.num_programs(2)

    @pl.when(k == 0)
    def _init():
        acc_ref[...] = jnp.zeros_like(acc_ref)
        msum_ref[...] = jnp.zeros_like(msum_ref)

    def accumulate(zero_seq_tail, zero_batch_tail):
        x = x_ref[...]                                  # (TB, tS, tH), native dtype
        m = mask_ref[...].astype(x.dtype)               # (TB, tS); 0/1 exact in bf16
        # Edge blocks read unspecified (possibly NaN/Inf) data past the array bounds.
        # Zero BOTH operands there so garbage never reaches a valid row's accumulator.
        if zero_seq_tail:
            col2 = lax.broadcasted_iota(jnp.int32, (TB, tS), 1)
            m = jnp.where(col2 < seq_rem, m, jnp.zeros((), m.dtype))
            col3 = lax.broadcasted_iota(jnp.int32, (TB, tS, tH), 1)
            x = jnp.where(col3 < seq_rem, x, jnp.zeros((), x.dtype))
        if zero_batch_tail:
            row3 = lax.broadcasted_iota(jnp.int32, (TB, tS, tH), 0)
            x = jnp.where(row3 < batch_rem, x, jnp.zeros((), x.dtype))

        # Single non-batched MXU matmul: block-diagonal (TB, TB*tS) mask LHS against the
        # x tile flattened to (TB*tS, tH), f32 accumulation.
        #   mask_bd[b, j] = m[b, j % tS] if b*tS <= j < (b+1)*tS else 0
        m_tiled = jnp.tile(m, (1, TB))                              # (TB, TB*tS)
        col_j = lax.broadcasted_iota(jnp.int32, (TB, TB * tS), 1)
        row_b = lax.broadcasted_iota(jnp.int32, (TB, TB * tS), 0)
        on_diag = (col_j >= row_b * tS) & (col_j < (row_b + 1) * tS)
        mask_bd = jnp.where(on_diag, m_tiled, jnp.zeros((), m.dtype))
        x_flat = x.reshape(TB * tS, tH)                             # leading-dim merge, free
        acc_ref[...] += jnp.dot(mask_bd, x_flat, preferred_element_type=jnp.float32)

        # Per-row token count for this tile (cross-lane reduce on the XLU).
        msum_ref[...] += jnp.sum(m.astype(jnp.float32), axis=-1, keepdims=True)

    last_k = k == nk - 1
    last_b = b == nb - 1
    # Static dispatch: only emit the edge-sanitizing variants that can actually occur;
    # pl.when keeps interior blocks from paying the extra elementwise pass over x.
    if seq_rem and batch_rem:
        @pl.when(last_k & last_b)
        def _tail_both():
            accumulate(True, True)

        @pl.when(last_k & jnp.logical_not(last_b))
        def _tail_seq():
            accumulate(True, False)

        @pl.when(jnp.logical_not(last_k) & last_b)
        def _tail_batch():
            accumulate(False, True)

        @pl.when(jnp.logical_not(last_k) & jnp.logical_not(last_b))
        def _interior():
            accumulate(False, False)
    elif seq_rem:
        @pl.when(last_k)
        def _tail_seq_only():
            accumulate(True, False)

        @pl.when(jnp.logical_not(last_k))
        def _interior_seq():
            accumulate(False, False)
    elif batch_rem:
        @pl.when(last_b)
        def _tail_batch_only():
            accumulate(False, True)

        @pl.when(jnp.logical_not(last_b))
        def _interior_batch():
            accumulate(False, False)
    else:
        accumulate(False, False)

    @pl.when(last_k)
    def _finalize():
        # torch.clamp(sum_mask, min=1e-9) then an exact divide -- once per output block,
        # fully hidden under the DMA stream (no approx reciprocal error).
        denom = jnp.maximum(msum_ref[...], jnp.float32(1e-9))       # (TB, 1)
        out_ref[...] = (acc_ref[...] / denom).astype(out_ref.dtype)


def _round_up(x, m):
    return ((x + m - 1) // m) * m


def _default_budgets():
    """(x_tile_budget_bytes, vmem_limit_bytes) sized for the local chip's VMEM."""
    try:
        vmem_cap = pltpu.get_tpu_info().vmem_capacity_bytes
    except Exception:
        vmem_cap = None
    if vmem_cap is not None and vmem_cap >= 128 * 1024 * 1024:
        # v5e / v6e: 128 MiB physical VMEM -> fatter tiles, fewer grid steps.
        return 32 * 1024 * 1024, 96 * 1024 * 1024
    # v7x (64 MiB physical VMEM) or unknown: 2 x 16 MiB x buffers still fit comfortably.
    return 16 * 1024 * 1024, 48 * 1024 * 1024


def mean_pooling(last_hidden_state, attention_mask, *, batch_block=8, seq_tile=None,
                 num_h_blocks=None, x_tile_budget_bytes=None, vmem_limit_bytes=None,
                 x_buffer_count=None):
    """last_hidden_state: [B, S, H]; attention_mask: [B, S] (any numeric/bool dtype).

    Returns the masked mean over the sequence axis, [B, H] float32.
    """
    B, S, H = last_hidden_state.shape
    assert attention_mask.shape == (B, S)
    if attention_mask.dtype == jnp.bool_:
        attention_mask = attention_mask.astype(jnp.int32)

    x_itemsize = jnp.dtype(last_hidden_state.dtype).itemsize
    m_itemsize = jnp.dtype(attention_mask.dtype).itemsize

    default_budget, default_limit = _default_budgets()
    if x_tile_budget_bytes is None:
        x_tile_budget_bytes = default_budget
    if vmem_limit_bytes is None:
        vmem_limit_bytes = default_limit

    # Batch tiling: take the whole batch as one block when it is small (no batch tail at
    # all; a full-dim block satisfies the layout rule), else 8-row blocks with an
    # in-kernel-sanitized tail block.
    TB = B if B <= batch_block else batch_block
    nb = pl.cdiv(B, TB)
    batch_rem = B % TB            # 0 -> no batch tail

    # Optional H split: gives the second v7x TensorCore work when there is only a single
    # batch block. Each H block's lane width must stay a multiple of 128.
    if num_h_blocks is None:
        num_h_blocks = 2 if (nb == 1 and H % 256 == 0) else 1
    assert H % num_h_blocks == 0
    tH = H // num_h_blocks
    assert num_h_blocks == 1 or tH % 128 == 0

    # Sequence tiling: largest multiple of 128 keeping one x buffer under budget, so the
    # double-buffered pipeline stays well inside VMEM while amortizing per-step overhead.
    if seq_tile is None:
        seq_tile = max((x_tile_budget_bytes // (TB * tH * x_itemsize)) // 128 * 128, 128)
    seq_tile = _round_up(seq_tile, 128)
    seq_tile = min(seq_tile, _round_up(S, 128))
    nk = pl.cdiv(S, seq_tile)
    seq_rem = S % seq_tile        # 0 -> no sequence tail

    grid = (nb, num_h_blocks, nk)

    x_spec_kwargs = {}
    if x_buffer_count is not None:
        # TODO(synk): sweep pl.Buffered(3) on v7x if the x DMA is still exposed there.
        x_spec_kwargs["pipeline_mode"] = pl.Buffered(x_buffer_count)

    kernel = functools.partial(mean_pool_kernel, seq_rem=seq_rem, batch_rem=batch_rem)

    out = pl.pallas_call(
        kernel,
        out_shape=jax.ShapeDtypeStruct((B, H), jnp.float32),
        grid=grid,
        in_specs=[
            pl.BlockSpec((TB, seq_tile, tH), lambda b, h, k: (b, k, h), **x_spec_kwargs),
            pl.BlockSpec((TB, seq_tile), lambda b, h, k: (b, k)),
        ],
        out_specs=pl.BlockSpec((TB, tH), lambda b, h, k: (b, h)),
        scratch_shapes=[
            pltpu.VMEM((TB, tH), jnp.float32),   # masked-sum accumulator
            pltpu.VMEM((TB, 1), jnp.float32),    # token-count accumulator
        ],
        compiler_params=pltpu.CompilerParams(
            dimension_semantics=("parallel", "parallel", "arbitrary"),
            vmem_limit_bytes=vmem_limit_bytes,
        ),
        cost_estimate=pl.CostEstimate(
            flops=2 * B * S * H,
            transcendentals=0,
            bytes_accessed=B * S * H * x_itemsize + B * S * m_itemsize + B * H * 4,
        ),
    )(last_hidden_state, attention_mask)

    return out


def mean_pooling_ref(last_hidden_state, attention_mask):
    """Pure-JAX reference reproducing the torch forward."""
    mask = attention_mask[..., None].astype(jnp.float32)                            # (B, S, 1)
    sum_embeddings = jnp.sum(last_hidden_state.astype(jnp.float32) * mask, axis=1)  # (B, H)
    sum_mask = jnp.maximum(jnp.sum(mask, axis=1), 1e-9)                             # clamp(min=1e-9)
    return sum_embeddings / sum_mask


if __name__ == "__main__":
    key = jax.random.PRNGKey(0)
    k1, k2, k3, k4, k5, k6, k7, k8 = jax.random.split(key, 8)

    # Case 1: small shapes consistent with the module (B=2, S=8, H=32); S << seq_tile.
    B, S, H = 2, 8, 32
    x1 = jax.random.normal(k1, (B, S, H), dtype=jnp.float32)
    m1 = (jax.random.uniform(k2, (B, S)) > 0.3).astype(jnp.int32)
    out1 = jax.block_until_ready(mean_pooling(x1, m1))
    ref1 = mean_pooling_ref(x1, m1)
    assert out1.shape == (B, H)
    assert jnp.allclose(out1, ref1, atol=1e-3, rtol=1e-3), "mismatch vs reference (small)"

    # Case 2: multi-tile sequence accumulation + sequence tail (S=300, seq_tile=128).
    B2, S2, H2 = 3, 300, 64
    x2 = jax.random.normal(k3, (B2, S2, H2), dtype=jnp.float32)
    m2 = (jax.random.uniform(k4, (B2, S2)) > 0.3).astype(jnp.int32)
    out2 = jax.block_until_ready(mean_pooling(x2, m2, seq_tile=128))
    ref2 = mean_pooling_ref(x2, m2)
    assert out2.shape == (B2, H2)
    assert jnp.allclose(out2, ref2, atol=1e-3, rtol=1e-3), "mismatch vs reference (tiled seq)"

    # Case 3: batch tail (B=12 with TB=8) + bf16 hidden states.
    B3, S3, H3 = 12, 200, 256
    x3 = jax.random.normal(k5, (B3, S3, H3), dtype=jnp.bfloat16)
    m3 = (jax.random.uniform(k6, (B3, S3)) > 0.3).astype(jnp.int32)
    out3 = jax.block_until_ready(mean_pooling(x3, m3, seq_tile=128))
    ref3 = mean_pooling_ref(x3, m3)
    assert out3.shape == (B3, H3)
    assert jnp.allclose(out3, ref3, atol=2e-2, rtol=2e-2), "mismatch vs reference (batch tail)"

    # Case 4: single batch block with the H-split parallel axis (v7x dual-TC path).
    B4, S4, H4 = 4, 300, 256
    x4 = jax.random.normal(k7, (B4, S4, H4), dtype=jnp.float32)
    m4 = (jax.random.uniform(k8, (B4, S4)) > 0.3).astype(jnp.int32)
    out4 = jax.block_until_ready(mean_pooling(x4, m4, seq_tile=128))
    ref4 = mean_pooling_ref(x4, m4)
    assert out4.shape == (B4, H4)
    assert jnp.allclose(out4, ref4, atol=1e-3, rtol=1e-3), "mismatch vs reference (H split)"

    print("KERNEL_OK")
</pallas_src>

<mosaic_0001>
module attributes {stable_mosaic.version = 11 : i64} {
  func.func @mean_pool_kernel(%arg0: i32, %arg1: i32, %arg2: i32, %arg3: memref<2x128x32xf32, #tpu.memory_space<vmem>>, %arg4: memref<2x128xi32, #tpu.memory_space<vmem>>, %arg5: memref<2x32xf32, #tpu.memory_space<vmem>>, %arg6: memref<2x32xf32, #tpu.memory_space<vmem>>, %arg7: memref<2x1xf32, #tpu.memory_space<vmem>>) attributes {dimension_semantics = [#tpu.dimension_semantics<parallel>, #tpu.dimension_semantics<parallel>, #tpu.dimension_semantics<arbitrary>], iteration_bounds = array<i64: 1, 1, 1>, scalar_prefetch = 0 : i64, scratch_operands = 2 : i64, tpu.core_type = #tpu.core_type<tc>, window_params = [{transform_indices = @transform_0, window_bounds = array<i64: 2, 128, 32>}, {transform_indices = @transform_1, window_bounds = array<i64: 2, 128>}, {transform_indices = @transform_2, window_bounds = array<i64: 2, 32>}]} {
    %c0_i32 = arith.constant 0 : i32
    %0 = arith.cmpi eq, %arg2, %c0_i32 : i32
    %1 = arith.extui %0 : i1 to i32
    %c0_i32_0 = arith.constant 0 : i32
    %2 = arith.cmpi ne, %1, %c0_i32_0 : i32
    scf.if %2 {
      %cst = arith.constant 0.000000e+00 : f32
      %11 = vector.broadcast %cst : f32 to vector<2x32xf32>
      %c0 = arith.constant 0 : index
      %c0_5 = arith.constant 0 : index
      %12 = vector.load %arg6[%c0, %c0_5] : memref<2x32xf32, #tpu.memory_space<vmem>>, vector<2x32xf32>
      tpu.vector_store %arg6[%c0, %c0_5], %11 {strides = array<i32>} : memref<2x32xf32, #tpu.memory_space<vmem>>, vector<2x32xf32>,
      %cst_6 = arith.constant 0.000000e+00 : f32
      %13 = vector.broadcast %cst_6 : f32 to vector<2x1xf32>
      %c0_7 = arith.constant 0 : index
      %c0_8 = arith.constant 0 : index
      %14 = vector.load %arg7[%c0_7, %c0_8] : memref<2x1xf32, #tpu.memory_space<vmem>>, vector<2x1xf32>
      tpu.vector_store %arg7[%c0_7, %c0_8], %13 {strides = array<i32>} : memref<2x1xf32, #tpu.memory_space<vmem>>, vector<2x1xf32>,
    } else {
    }
    %c0_i32_1 = arith.constant 0 : i32
    %3 = arith.cmpi eq, %arg2, %c0_i32_1 : i32
    %4 = arith.extui %3 : i1 to i32
    %c0_i32_2 = arith.constant 0 : i32
    %5 = arith.cmpi ne, %4, %c0_i32_2 : i32
    scf.if %5 {
      %c0 = arith.constant 0 : index
      %c0_5 = arith.constant 0 : index
      %c0_6 = arith.constant 0 : index
      %11 = vector.load %arg3[%c0, %c0_5, %c0_6] : memref<2x128x32xf32, #tpu.memory_space<vmem>>, vector<2x128x32xf32>
      %c0_7 = arith.constant 0 : index
      %c0_8 = arith.constant 0 : index
      %12 = vector.load %arg4[%c0_7, %c0_8] : memref<2x128xi32, #tpu.memory_space<vmem>>, vector<2x128xi32>
      %13 = arith.sitofp %12 : vector<2x128xi32> to vector<2x128xf32>
      %14 = tpu.iota {dimensions = array<i32: 1>} : vector<2x128xi32>
      %c8_i32 = arith.constant 8 : i32
      %15 = vector.broadcast %c8_i32 : i32 to vector<2x128xi32>
      %16 = arith.cmpi slt, %14, %15 : vector<2x128xi32>
      %cst = arith.constant 0.000000e+00 : f32
      %17 = vector.broadcast %cst : f32 to vector<2x128xf32>
      %18 = arith.select %16, %13, %17 : vector<2x128xi1>, vector<2x128xf32>
      %19 = tpu.iota {dimensions = array<i32: 1>} : vector<2x128x32xi32>
      %c8_i32_9 = arith.constant 8 : i32
      %20 = vector.broadcast %c8_i32_9 : i32 to vector<2x128x32xi32>
      %21 = arith.cmpi slt, %19, %20 : vector<2x128x32xi32>
      %cst_10 = arith.constant 0.000000e+00 : f32
      %22 = vector.broadcast %cst_10 : f32 to vector<2x128x32xf32>
      %23 = arith.select %21, %11, %22 : vector<2x128x32xi1>, vector<2x128x32xf32>
      %24 = tpu.concatenate %18, %18 in 1 : vector<2x128xf32>, vector<2x128xf32> -> vector<2x256xf32>
      %25 = tpu.iota {dimensions = array<i32: 1>} : vector<2x256xi32>
      %26 = tpu.iota {dimensions = array<i32: 0>} : vector<2x256xi32>
      %c128_i32 = arith.constant 128 : i32
      %27 = vector.broadcast %c128_i32 : i32 to vector<2x256xi32>
      %28 = arith.muli %26, %27 : vector<2x256xi32>
      %29 = arith.cmpi sge, %25, %28 : vector<2x256xi32>
      %c1_i32 = arith.constant 1 : i32
      %30 = vector.broadcast %c1_i32 : i32 to vector<2x256xi32>
      %31 = arith.addi %26, %30 : vector<2x256xi32>
      %c128_i32_11 = arith.constant 128 : i32
      %32 = vector.broadcast %c128_i32_11 : i32 to vector<2x256xi32>
      %33 = arith.muli %31, %32 : vector<2x256xi32>
      %34 = arith.cmpi slt, %25, %33 : vector<2x256xi32>
      %35 = arith.andi %29, %34 : vector<2x256xi1>
      %cst_12 = arith.constant 0.000000e+00 : f32
      %36 = vector.broadcast %cst_12 : f32 to vector<2x256xf32>
      %37 = arith.select %35, %24, %36 : vector<2x256xi1>, vector<2x256xf32>
      %38 = vector.shape_cast %23 : vector<2x128x32xf32> to vector<256x32xf32>
      %c0_13 = arith.constant 0 : index
      %c0_14 = arith.constant 0 : index
      %39 = vector.load %arg6[%c0_13, %c0_14] : memref<2x32xf32, #tpu.memory_space<vmem>>, vector<2x32xf32>
      %cst_15 = arith.constant dense<0.000000e+00> : vector<2x32xf32>
      %40 = tpu.matmul %37, %38, %cst_15 {dimension_numbers = #tpu.dot_dimension_numbers<[1], [0], [0], [1], [0, 0, 1, 1], [], []>} : vector<2x256xf32>, vector<256x32xf32>, vector<2x32xf32> -> vector<2x32xf32>
      %41 = arith.addf %39, %40 : vector<2x32xf32>
      %c0_16 = arith.constant 0 : index
      %c0_17 = arith.constant 0 : index
      %42 = vector.load %arg6[%c0_16, %c0_17] : memref<2x32xf32, #tpu.memory_space<vmem>>, vector<2x32xf32>
      tpu.vector_store %arg6[%c0_16, %c0_17], %41 {strides = array<i32>} : memref<2x32xf32, #tpu.memory_space<vmem>>, vector<2x32xf32>,
      %c0_18 = arith.constant 0 : index
      %c0_19 = arith.constant 0 : index
      %43 = vector.load %arg7[%c0_18, %c0_19] : memref<2x1xf32, #tpu.memory_space<vmem>>, vector<2x1xf32>
      %cst_20 = arith.constant dense<0.000000e+00> : vector<2xf32>
      %44 = vector.multi_reduction <add>, %18, %cst_20 [1] : vector<2x128xf32> to vector<2xf32>
      %45 = vector.shape_cast %44 : vector<2xf32> to vector<2x1xf32>
      %46 = arith.addf %43, %45 : vector<2x1xf32>
      %c0_21 = arith.constant 0 : index
      %c0_22 = arith.constant 0 : index
      %47 = vector.load %arg7[%c0_21, %c0_22] : memref<2x1xf32, #tpu.memory_space<vmem>>, vector<2x1xf32>
      tpu.vector_store %arg7[%c0_21, %c0_22], %46 {strides = array<i32>} : memref<2x1xf32, #tpu.memory_space<vmem>>, vector<2x1xf32>,
    } else {
    }
    %true = arith.constant true
    %6 = arith.xori %3, %true : i1
    %7 = arith.extui %6 : i1 to i32
    %c0_i32_3 = arith.constant 0 : i32
    %8 = arith.cmpi ne, %7, %c0_i32_3 : i32
    scf.if %8 {
      %c0 = arith.constant 0 : index
      %c0_5 = arith.constant 0 : index
      %c0_6 = arith.constant 0 : index
      %11 = vector.load %arg3[%c0, %c0_5, %c0_6] : memref<2x128x32xf32, #tpu.memory_space<vmem>>, vector<2x128x32xf32>
      %c0_7 = arith.constant 0 : index
      %c0_8 = arith.constant 0 : index
      %12 = vector.load %arg4[%c0_7, %c0_8] : memref<2x128xi32, #tpu.memory_space<vmem>>, vector<2x128xi32>
      %13 = arith.sitofp %12 : vector<2x128xi32> to vector<2x128xf32>
      %14 = tpu.concatenate %13, %13 in 1 : vector<2x128xf32>, vector<2x128xf32> -> vector<2x256xf32>
      %15 = tpu.iota {dimensions = array<i32: 1>} : vector<2x256xi32>
      %16 = tpu.iota {dimensions = array<i32: 0>} : vector<2x256xi32>
      %c128_i32 = arith.constant 128 : i32
      %17 = vector.broadcast %c128_i32 : i32 to vector<2x256xi32>
      %18 = arith.muli %16, %17 : vector<2x256xi32>
      %19 = arith.cmpi sge, %15, %18 : vector<2x256xi32>
      %c1_i32 = arith.constant 1 : i32
      %20 = vector.broadcast %c1_i32 : i32 to vector<2x256xi32>
      %21 = arith.addi %16, %20 : vector<2x256xi32>
      %c128_i32_9 = arith.constant 128 : i32
      %22 = vector.broadcast %c128_i32_9 : i32 to vector<2x256xi32>
      %23 = arith.muli %21, %22 : vector<2x256xi32>
      %24 = arith.cmpi slt, %15, %23 : vector<2x256xi32>
      %25 = arith.andi %19, %24 : vector<2x256xi1>
      %cst = arith.constant 0.000000e+00 : f32
      %26 = vector.broadcast %cst : f32 to vector<2x256xf32>
      %27 = arith.select %25, %14, %26 : vector<2x256xi1>, vector<2x256xf32>
      %28 = vector.shape_cast %11 : vector<2x128x32xf32> to vector<256x32xf32>
      %c0_10 = arith.constant 0 : index
      %c0_11 = arith.constant 0 : index
      %29 = vector.load %arg6[%c0_10, %c0_11] : memref<2x32xf32, #tpu.memory_space<vmem>>, vector<2x32xf32>
      %cst_12 = arith.constant dense<0.000000e+00> : vector<2x32xf32>
      %30 = tpu.matmul %27, %28, %cst_12 {dimension_numbers = #tpu.dot_dimension_numbers<[1], [0], [0], [1], [0, 0, 1, 1], [], []>} : vector<2x256xf32>, vector<256x32xf32>, vector<2x32xf32> -> vector<2x32xf32>
      %31 = arith.addf %29, %30 : vector<2x32xf32>
      %c0_13 = arith.constant 0 : index
      %c0_14 = arith.constant 0 : index
      %32 = vector.load %arg6[%c0_13, %c0_14] : memref<2x32xf32, #tpu.memory_space<vmem>>, vector<2x32xf32>
      tpu.vector_store %arg6[%c0_13, %c0_14], %31 {strides = array<i32>} : memref<2x32xf32, #tpu.memory_space<vmem>>, vector<2x32xf32>,
      %c0_15 = arith.constant 0 : index
      %c0_16 = arith.constant 0 : index
      %33 = vector.load %arg7[%c0_15, %c0_16] : memref<2x1xf32, #tpu.memory_space<vmem>>, vector<2x1xf32>
      %cst_17 = arith.constant dense<0.000000e+00> : vector<2xf32>
      %34 = vector.multi_reduction <add>, %13, %cst_17 [1] : vector<2x128xf32> to vector<2xf32>
      %35 = vector.shape_cast %34 : vector<2xf32> to vector<2x1xf32>
      %36 = arith.addf %33, %35 : vector<2x1xf32>
      %c0_18 = arith.constant 0 : index
      %c0_19 = arith.constant 0 : index
      %37 = vector.load %arg7[%c0_18, %c0_19] : memref<2x1xf32, #tpu.memory_space<vmem>>, vector<2x1xf32>
      tpu.vector_store %arg7[%c0_18, %c0_19], %36 {strides = array<i32>} : memref<2x1xf32, #tpu.memory_space<vmem>>, vector<2x1xf32>,
    } else {
    }
    %9 = arith.extui %3 : i1 to i32
    %c0_i32_4 = arith.constant 0 : i32
    %10 = arith.cmpi ne, %9, %c0_i32_4 : i32
    scf.if %10 {
      %c0 = arith.constant 0 : index
      %c0_5 = arith.constant 0 : index
      %11 = vector.load %arg7[%c0, %c0_5] : memref<2x1xf32, #tpu.memory_space<vmem>>, vector<2x1xf32>
      %cst = arith.constant 9.99999971E-10 : f32
      %12 = vector.broadcast %cst : f32 to vector<2x1xf32>
      %13 = arith.maximumf %11, %12 : vector<2x1xf32>
      %c0_6 = arith.constant 0 : index
      %c0_7 = arith.constant 0 : index
      %14 = vector.load %arg6[%c0_6, %c0_7] : memref<2x32xf32, #tpu.memory_space<vmem>>, vector<2x32xf32>
      %15 = vector.broadcast %13 : vector<2x1xf32> to vector<2x32xf32>
      %16 = arith.divf %14, %15 : vector<2x32xf32>
      %c0_8 = arith.constant 0 : index
      %c0_9 = arith.constant 0 : index
      %17 = vector.load %arg5[%c0_8, %c0_9] : memref<2x32xf32, #tpu.memory_space<vmem>>, vector<2x32xf32>
      tpu.vector_store %arg5[%c0_8, %c0_9], %16 {strides = array<i32>} : memref<2x32xf32, #tpu.memory_space<vmem>>, vector<2x32xf32>,
    } else {
    }
    return
  }
  func.func @transform_0(%arg0: i32, %arg1: i32, %arg2: i32) -> (i32, i32, i32) {
    %c0_i32 = arith.constant 0 : i32
    return %arg0, %arg2, %arg1 : i32, i32, i32
  }
  func.func @transform_1(%arg0: i32, %arg1: i32, %arg2: i32) -> (i32, i32) {
    %c0_i32 = arith.constant 0 : i32
    return %arg0, %arg2 : i32, i32
  }
  func.func @transform_2(%arg0: i32, %arg1: i32, %arg2: i32) -> (i32, i32) {
    %c0_i32 = arith.constant 0 : i32
    return %arg0, %arg1 : i32, i32
  }
}

</mosaic_0001>

<bundles_post_ra>
// kernel: tpu_custom_call.1
= control target key start
LH: loop header
LB: loop body
LE: loop exit
PB: predicated region body
PF: predicated region fallthrough
CT: control target
= control target key end

     0   :  { %7 = vsyncpa [#allocation5], 0  ;;  %s532_s0 = inlined_call_operand.hbm [shape: f32[2,8,32], index: 0, kind: input, shape index: {}]   ;;  %s533_s1 = inlined_call_operand.vmem [shape: s32[2,8], index: 1, kind: input, shape index: {}]   ;;  %s534_s2 = inlined_call_operand.hbm [shape: f32[2,32], index: 2, kind: output, shape index: {}]  }
   0x1   :  { %8 = vsyncpa [#allocation6], 0 }
   0x2   :  { %13 = vsyncadd [#allocation5], 3840  ;;  %s18_s9 = sld [smem:[#allocation0]]   ;;  %s483_s10 = smov [#allocation4]  }
   0x3   :  { %s26_s11 = sshll.u32 %s483_s10, 4  ;;  %s484_s12 = smov 128   ;;  %s27_s11 = int_to_ptr.vmem [resolvable:$true] %s26_s11 }
   0x4   :  { %33 = sst [smem:[#allocation9]] %s484_s12  ;;  %s485_s13 = smov 2048  }
   0x5   :  { %35 = sst [smem:[#allocation9 + $0x1]] %s485_s13  ;;  %s486_s14 = smov 1  }
   0x6   :  { %37 = sst [smem:[#allocation9 + $0x2]] %s486_s14  ;;  %s487_s17 = smov 8  }
   0x7   :  { %39 = sst [smem:[#allocation9 + $0x3]] %s484_s12  ;;  %s488_s18 = smov [#allocation5]  }
   0x8   :  { %s420_s15 = sshll.u32 %s18_s9, 26  ;;  %41 = sst [smem:[#allocation9 + $0x4]] %s484_s12 }
   0x9   :  { %s421_s16 = sadd.s32 134217728, %s420_s15  ;;  %43 = sst [smem:[#allocation9 + $0x5]] %s487_s17 }
   0xa   :  { %s489_s19 = smov [#allocation8]  }
   0xb   :  { %45 = dma.general %s532_s0, 256, %s27_s11, %s488_s18, %s489_s19, [#allocation9], %s421_s16, 0  }
   0xc   :  { %479 = dma.done.wait [#allocation5], 4096  }
   0xd   :  { %480 = vsyncadd [#allocation5], 4294963200  ;;  %v93_v0 = vlaneseq  ;;  %v490_v1 = vmov 0.0|0.0   ;;  %vm57_vm0 = vcmask 1024   ;;  %v491_v3 = vmov 0.0   ;;  %v59_v10 = vld [vmem:[#allocation4] sm:$0xff] }
   0xe   :  { %426 = vmatprep.subr.bf16.mxu0 %v490_v1  ;;  %58 = vst.msk [vmem:[#allocation3] sm:$0x3] %vm57_vm0, %v491_v3  ;;  %v91_v9 = vld [vmem:[%s533_s1] sm:$0x3]  ;;  %vm248_vm3 = vcmask 1041408   ;;  %v427_v12 = vpack.c.bf16 %v491_v3, %v59_v10  ;;  %v492_v15 = vmov 0  }
   0xf   :  { %v94_v2 = vand.u32 127, %v93_v0  ;;  %v98_v4 = vshrl.u32 %v93_v0, 7  ;;  %v92_v11 = vcvt.s32.f32 %v91_v9  ;;  %454 = vset.pattern.permute.xlu0 %v492_v15  ;;  %vm55_vm8 = vcmask 254976   ;;  %v75_v16 = vld [vmem:[#allocation4 + $0x80] sm:$0xff]  ;;  %s493_s0 = smov [#allocation7]  }
  0x10   :  { %428 = vmatpush1.bf16.msra.mxu0 %v427_v12  ;;  %56 = vst.msk [vmem:[#allocation2] sm:$0x3] %vm55_vm8, %v491_v3  ;;  %s411_s1 = sshll.u32 %s493_s0, 4  ;;  %s412_s1 = int_to_ptr.vmem [resolvable:$true] %s411_s1 }
  0x11   :  { %v162_v5 = vadd.s32 128, %v94_v2  ;;  %v163_v6 = vmul.u32 128, %v98_v4  ;;  %v166_v7 = vadd.s32 1, %v98_v4  ;;  %vm95_vm2 = vcmp.lt.s32.totalorder %v94_v2, 8  ;;  %429 = vmatprep.subr.bf16.mxu0 %v490_v1  ;;  %s457_s24 = scalar_lea.vmem %s412_s1, 32  ;;  %p462_p1 = scmp.lt.s32.totalorder %s412_s1, %s412_s1 }
  0x12   :  { %v96_v13 = vsel %vm95_vm2, %v92_v11, 0.0  ;;  %p458_p0 = scmp.ne.s32.totalorder %s412_s1, %s457_s24  ;;  %p463_p2 = scmp.lt.s32.totalorder %s457_s24, %s457_s24 }
  0x13   :  { %vm165_vm1 = vcmp.ge.s32.totalorder %v162_v5, %v163_v6  ;;  %v167_v8 = vmul.u32 128, %v166_v7  ;;  %v249_v14 = vsel %vm248_vm3, %v96_v13, 0.0  ;;  %vm164_vm6 = vcmp.ge.s32.totalorder %v94_v2, %v163_v6 }
  0x14   :  { %250 = vadd.xlane.f32.xlu0 %v249_v14  ;;  %430 = vmatpush1.bf16.msra.mxu0 %v490_v1  ;;  %p464_p3 = por %p463_p2, %p462_p1 }
  0x15   :  { %vm169_vm4 = vcmp.lt.s32.totalorder %v162_v5, %v167_v8  ;;  %431 = vmatprep.subr.bf16.mxu0 %v490_v1  ;;  %vm168_vm7 = vcmp.lt.s32.totalorder %v94_v2, %v167_v8  ;;  %v247_v17 = vld [vmem:[#allocation3] sm:$0x3] }
  0x16   :  { %vm171_vm5 = vmand %vm165_vm1, %vm169_vm4  ;;  %p465_p4 = pnand %p464_p3, %p458_p0 }
  0x17   :  { %422 = vmatprep.mubr.msk.f32.mxu0 %vm171_vm5, %v96_v13  ;;  %vm170_vm9 = vmand %vm164_vm6, %vm168_vm7  ;;  %v174_v22 = vld [vmem:[#allocation2] sm:$0x3] }
  0x18   :  { %432 = vmatpush1.bf16.msra.mxu0 %v490_v1 }
  0x19   :  { %433 = vmatprep.subr.bf16.mxu0 %v490_v1 }
  0x1c   :  { %434 = vmatpush1.bf16.msra.mxu0 %v490_v1 }
  0x1d   :  { %435 = vmatprep.subr.bf16.mxu0 %v490_v1 }
  0x20   :  { %436 = vmatpush1.bf16.msra.mxu0 %v490_v1 }
  0x21   :  { %437 = vmatprep.subr.bf16.mxu0 %v490_v1 }
  0x24   :  { %438 = vmatpush1.bf16.msra.mxu0 %v490_v1 }
  0x25   :  { %439 = vmatprep.subr.bf16.mxu0 %v490_v1 }
  0x28   :  { %440 = vmatpush1.bf16.msra.mxu0 %v490_v1 }
  0x29   :  { %441 = vmatprep.subr.bf16.mxu0 %v490_v1 }
  0x2c   :  { %442 = vmatpush1.bf16.msra.mxu0 %v490_v1 }
  0x2d   :  { %207 = vmatprep.subr.mxu0 %v491_v3 }
  0x30   :  { %208 = vmatpush1.msra.mxu0 %v75_v16 }
  0x31   :  { %423 = vmatmul.mubr.msk.f32.vlgmr.msra.gmra.mrb[0].mxu0 %vm170_vm9, %v96_v13 }
  0xa1   :  { %v251_v18 = vpop.xlane.xlu0 %250 }
  0xa2   :  { %v252_v19 = vadd.f32 %v251_v18, %v247_v17 }
  0xa4   :  { %253 = vst.msk [vmem:[#allocation3] sm:$0x3] %vm57_vm0, %v252_v19 }
  0xab   :  { %v393_v20 = vld [vmem:[#allocation3] sm:$0x3] }
  0xac   :  { %v394_v21 = vmax.f32 %v393_v20, 1e-09 }
  0xae   :  { %398 = vperm.xlu0 %454, %v394_v21  }
 0x104   :  { %v241_v23 = vpop.f32.mrb[0].mxu0 }
 0x105   :  { %v245_v24 = vadd.f32 %v241_v23, %v174_v22  ;;  %v243_v25 = vpop.f32.mrb[1].mxu0 }
 0x107   :  { %246 = vst.msk [vmem:[#allocation2] sm:$0x3] %vm55_vm8, %v245_v24 }
 0x10e   :  { %v395_v27 = vld [vmem:[#allocation2] sm:$0x3] }
 0x12d   :  { %v399_v26 = vpop.permute.xlu0 %398 }
 0x12e   :  { %455 = vrcp.f32 %v399_v26 }
 0x138   :  { %v456_v28 = vpop.eup %455 }
 0x139   :  { %v402_v29 = vmul.f32 %v456_v28, %v395_v27 }
 0x13b   :  { %404 = vst.msk [vmem:[#allocation7] sm:$0x3] %vm55_vm8, %v402_v29 }
 0x13c   :  { %468 = shalt.err (!%p465_p4)
}
 0x13d   :  { %s469_s27 = scalar_lea.hbm %s534_s2, 32 }
 0x13e   :  { %p470_p5 = scmp.ne.s32.totalorder %s534_s2, %s469_s27  ;;  %p473_p6 = scmp.lt.u32.totalorder %s469_s27, %s534_s2 }
 0x140   :  { %p475_p7 = pnand %p473_p6, %p470_p5 }
 0x142   :  { %478 = shalt.err (!%p475_p7)
}
 0x143   :  { %414 = dma.vmem_to_hbm [thread:$0]  %s412_s1, 32, %s534_s2, [#allocation6]  }
 0x144   :  { %481 = dma.done.wait [#allocation6], 32  }
 0x145   :  { %482 = vsyncadd [#allocation6], 4294967264 }
 0x146   :  { %418 = vsyncpa [#allocation5], 1 }
 0x147   :  { %419 = vsyncpa [#allocation6], 1 }

</bundles_post_ra>
